<compile_context>
chip_gen: v7x
topology: tpu7x:2x2x1
jax: 0.10.0
libtpu: 0.0.40
codegen_flags: <defaults>
</compile_context>

<pallas_src>
import jax
import jax.numpy as jnp
from jax.experimental import pallas as pl
from jax.experimental.pallas import tpu as pltpu


def _gaussian_mf_kernel(params_ref, x_ref, o_ref):
    # params_ref lives in SMEM: [mu, -1/(2*sigma^2)] as f32 scalars.
    mu = params_ref[0]
    neg_inv_two_sigma_sq = params_ref[1]
    x = x_ref[...].astype(jnp.float32)
    d = x - mu
    o_ref[...] = jnp.exp(d * d * neg_inv_two_sigma_sq).astype(o_ref.dtype)


def _round_up(a, b):
    return (a + b - 1) // b * b


def gaussian_mf(x, mu, sigma):
    """Elementwise Gaussian membership function via Pallas.

    x: any-shape float array (e.g. NCHW). mu, sigma: python floats or traced
    scalars (mirrors the learnable nn.Parameters). Returns array with the
    same shape/dtype as x.
    """
    orig_shape = x.shape
    orig_dtype = x.dtype

    flat = x.reshape(-1)
    n = flat.shape[0]

    # Lane-dense last dim: prefer a wide (512) slab, fall back to 128.
    if n % 512 == 0:
        lanes = 512
    else:
        lanes = 128
    n_pad = (-n) % lanes
    if n_pad:
        # Only hit when n is not a multiple of 128 (rare for NCHW tensors).
        flat = jnp.concatenate([flat, jnp.zeros((n_pad,), dtype=flat.dtype)])
    rows = flat.shape[0] // lanes
    slab = flat.reshape(rows, lanes)

    # ~2 MiB (f32) per block per array.
    target_block_elems = 512 * 1024
    block_rows_target = max(8, (target_block_elems // lanes) // 8 * 8)
    # Either a multiple of 8 (divisibility rule) or the full row extent.
    block_rows = min(block_rows_target, rows)
    grid = (pl.cdiv(rows, block_rows),)

    # Hoist the scalar math out of the per-element path.
    mu_f = jnp.asarray(mu, jnp.float32)
    sigma_f = jnp.asarray(sigma, jnp.float32)
    params = jnp.stack([mu_f, -0.5 / (sigma_f * sigma_f)]).astype(jnp.float32)

    out = pl.pallas_call(
        _gaussian_mf_kernel,
        out_shape=jax.ShapeDtypeStruct((rows, lanes), orig_dtype),
        grid_spec=pl.GridSpec(
            grid=grid,
            in_specs=[
                pl.BlockSpec(memory_space=pltpu.SMEM),      # [mu, -1/(2*sigma^2)]
                pl.BlockSpec((block_rows, lanes), lambda i: (i, 0)),
            ],
            out_specs=pl.BlockSpec((block_rows, lanes), lambda i: (i, 0)),
        ),
        compiler_params=pltpu.CompilerParams(
            dimension_semantics=("parallel",),
        ),
    )(params, slab)

    out_flat = out.reshape(-1)
    if n_pad:
        out_flat = out_flat[:n]
    return out_flat.reshape(orig_shape)


if __name__ == "__main__":
    # Deterministic parameters (mirrors GaussianMF(mu=0.5, sigma=1.25)).
    mu = 0.5
    sigma = 1.25

    key = jax.random.PRNGKey(0)
    x = jax.random.normal(key, (2, 4, 16, 16), dtype=jnp.float32)  # NCHW

    y = gaussian_mf(x, mu, sigma)
    y = jax.block_until_ready(y)

    # Reference check in plain JAX.
    y_ref = jnp.exp(-jnp.square(x - mu) / (2.0 * sigma ** 2))
    assert y.shape == x.shape and y.dtype == x.dtype
    assert jnp.allclose(y, y_ref, atol=1e-6, rtol=1e-6)

    print("KERNEL_OK")
</pallas_src>

<mosaic_0001>
module attributes {stable_mosaic.version = 11 : i64} {
  func.func @_gaussian_mf_kernel(%arg0: i32, %arg1: memref<2xf32, #tpu.memory_space<smem>>, %arg2: memref<4x512xf32, #tpu.memory_space<vmem>>, %arg3: memref<4x512xf32, #tpu.memory_space<vmem>>) attributes {dimension_semantics = [#tpu.dimension_semantics<parallel>], iteration_bounds = array<i64: 1>, scalar_prefetch = 0 : i64, scratch_operands = 0 : i64, tpu.core_type = #tpu.core_type<tc>, window_params = [{transform_indices = @transform_0, window_bounds = array<i64: 2>}, {transform_indices = @transform_1, window_bounds = array<i64: 4, 512>}, {transform_indices = @transform_2, window_bounds = array<i64: 4, 512>}]} {
    %c0 = arith.constant 0 : index
    %0 = memref.load %arg1[%c0] : memref<2xf32, #tpu.memory_space<smem>>
    %c1 = arith.constant 1 : index
    %1 = memref.load %arg1[%c1] : memref<2xf32, #tpu.memory_space<smem>>
    %c0_0 = arith.constant 0 : index
    %c0_1 = arith.constant 0 : index
    %2 = vector.load %arg2[%c0_0, %c0_1] : memref<4x512xf32, #tpu.memory_space<vmem>>, vector<4x512xf32>
    %3 = vector.broadcast %0 : f32 to vector<4x512xf32>
    %4 = arith.subf %2, %3 : vector<4x512xf32>
    %5 = arith.mulf %4, %4 : vector<4x512xf32>
    %6 = vector.broadcast %1 : f32 to vector<4x512xf32>
    %7 = arith.mulf %5, %6 : vector<4x512xf32>
    %8 = math.exp %7 : vector<4x512xf32>
    %c0_2 = arith.constant 0 : index
    %c0_3 = arith.constant 0 : index
    %9 = vector.load %arg3[%c0_2, %c0_3] : memref<4x512xf32, #tpu.memory_space<vmem>>, vector<4x512xf32>
    tpu.vector_store %arg3[%c0_2, %c0_3], %8 {strides = array<i32>} : memref<4x512xf32, #tpu.memory_space<vmem>>, vector<4x512xf32>,
    return
  }
  func.func @transform_0(%arg0: i32) -> i32 {
    %c0_i32 = arith.constant 0 : i32
    %c0_i32_0 = arith.constant 0 : i32
    return %c0_i32 : i32
  }
  func.func @transform_1(%arg0: i32) -> (i32, i32) {
    %c0_i32 = arith.constant 0 : i32
    %c0_i32_0 = arith.constant 0 : i32
    return %arg0, %c0_i32 : i32, i32
  }
  func.func @transform_2(%arg0: i32) -> (i32, i32) {
    %c0_i32 = arith.constant 0 : i32
    %c0_i32_0 = arith.constant 0 : i32
    return %arg0, %c0_i32 : i32, i32
  }
}

</mosaic_0001>

<bundles_post_ra>
// kernel: tpu_custom_call.1
= control target key start
LH: loop header
LB: loop body
LE: loop exit
PB: predicated region body
PF: predicated region fallthrough
CT: control target
= control target key end

     0   :  { %7 = vsyncpa [#allocation5], 0  ;;  %s191_s0 = inlined_call_operand.hbm [shape: f32[2], index: 0, kind: input, shape index: {}]   ;;  %s192_s1 = inlined_call_operand.hbm [shape: f32[4,512], index: 1, kind: input, shape index: {}]   ;;  %s193_s2 = inlined_call_operand.hbm [shape: f32[4,512], index: 2, kind: output, shape index: {}]  }
   0x1   :  { %8 = vsyncpa [#allocation3], 0 }
   0x2   :  { %9 = vsyncpa [#allocation4], 0  ;;  %s77_s11 = scalar_lea.hbm %s191_s0, 16 }
   0x3   :  { %p78_p0 = scmp.ne.s32.totalorder %s191_s0, %s77_s11  ;;  %p81_p1 = scmp.lt.u32.totalorder %s77_s11, %s191_s0 }
   0x5   :  { %p83_p2 = pnand %p81_p1, %p78_p0 }
   0x7   :  { %86 = shalt.err (!%p83_p2)
}
   0x8   :  { %s137_s16 = smov [#allocation2]   ;;  %s138_s19 = smov [#allocation6]  }
   0x9   :  { %17 = dma.hbm_to_smem %s191_s0, 16, %s137_s16, [#allocation5]  }
   0xa   :  { %s24_s20 = sshll.u32 %s138_s19, 4  ;;  %s87_s23 = scalar_lea.hbm %s192_s1, 256  ;;  %s25_s20 = int_to_ptr.vmem [resolvable:$true] %s24_s20 }
   0xb   :  { %p88_p3 = scmp.ne.s32.totalorder %s192_s1, %s87_s23  ;;  %p91_p4 = scmp.lt.u32.totalorder %s87_s23, %s192_s1 }
   0xd   :  { %p93_p5 = pnand %p91_p4, %p88_p3 }
   0xf   :  { %96 = shalt.err (!%p93_p5)
}
  0x10   :  { %s97_s28 = scalar_lea.vmem %s25_s20, 256  ;;  %p102_p7 = scmp.lt.s32.totalorder %s25_s20, %s25_s20 }
  0x11   :  { %p98_p6 = scmp.ne.s32.totalorder %s25_s20, %s97_s28  ;;  %p103_p8 = scmp.lt.s32.totalorder %s97_s28, %s97_s28 }
  0x13   :  { %p104_p9 = por %p103_p8, %p102_p7 }
  0x15   :  { %p105_p10 = pnand %p104_p9, %p98_p6 }
  0x17   :  { %108 = shalt.err (!%p105_p10)
}
  0x18   :  { %27 = dma.hbm_to_vmem [thread:$0]  %s192_s1, 256, %s25_s20, [#allocation3]  }
  0x19   :  { %131 = dma.done.wait [#allocation5], 16  }
  0x1a   :  { %132 = vsyncadd [#allocation5], 4294967280 }
  0x1b   :  { %133 = dma.done.wait [#allocation3], 256  }
  0x1c   :  { %134 = vsyncadd [#allocation3], 4294967040 }
  0x1d   :  { %34 = sfence }
  0x1e   :  { %s35_s30 = sld [smem:[#allocation2]]  ;;  %s69_s3 = sld [smem:[#allocation2 + $0x1]]  ;;  %v37_v0 = vld [vmem:[#allocation6] sm:$0xff]  ;;  %v38_v1 = vld [vmem:[#allocation6 + $0x8] sm:$0xff] }
  0x1f   :  { %s139_s1 = smov [#allocation7]  }
  0x20   :  { %s59_s4 = sshll.u32 %s139_s1, 4  ;;  %s60_s4 = int_to_ptr.vmem [resolvable:$true] %s59_s4 }
  0x21   :  { %s109_s5 = scalar_lea.vmem %s60_s4, 256  ;;  %p114_p12 = scmp.lt.s32.totalorder %s60_s4, %s60_s4 }
  0x22   :  { %p110_p11 = scmp.ne.s32.totalorder %s60_s4, %s109_s5  ;;  %p115_p13 = scmp.lt.s32.totalorder %s109_s5, %s109_s5 }
  0x24   :  { %v39_v2 = vstv %s35_s30  ;;  %v44_v5 = vstv %s69_s3  ;;  %p116_p0 = por %p115_p13, %p114_p12 }
  0x25   :  { %v40_v3 = vsub.f32 %v37_v0, %v39_v2  ;;  %v41_v4 = vsub.f32 %v38_v1, %v39_v2 }
  0x26   :  { %p117_p1 = pnand %p116_p0, %p110_p11 }
  0x27   :  { %v42_v6 = vmul.f32 %v40_v3, %v40_v3  ;;  %v43_v7 = vmul.f32 %v41_v4, %v41_v4 }
  0x29   :  { %v45_v8 = vmul.f32 %v44_v5, %v42_v6  ;;  %v46_v9 = vmul.f32 %v44_v5, %v43_v7 }
  0x2b   :  { %v47_v10 = vmul.f32 1.442695, %v45_v8  ;;  %v49_v11 = vmul.f32 1.442695, %v46_v9 }
  0x2d   :  { %73 = vpow2.f32 %v47_v10 }
  0x2e   :  { %75 = vpow2.f32 %v49_v11 }
  0x37   :  { %v74_v12 = vpop.eup %73 }
  0x38   :  { %v76_v13 = vpop.eup %75  ;;  %51 = vst [vmem:[#allocation7] sm:$0xff] %v74_v12 }
  0x39   :  { %52 = vst [vmem:[#allocation7 + $0x8] sm:$0xff] %v76_v13 }
  0x3a   :  { %120 = shalt.err (!%p117_p1)
}
  0x3b   :  { %s121_s8 = scalar_lea.hbm %s193_s2, 256 }
  0x3c   :  { %p122_p2 = scmp.ne.s32.totalorder %s193_s2, %s121_s8  ;;  %p125_p3 = scmp.lt.u32.totalorder %s121_s8, %s193_s2 }
  0x3e   :  { %p127_p4 = pnand %p125_p3, %p122_p2 }
  0x40   :  { %130 = shalt.err (!%p127_p4)
}
  0x41   :  { %62 = dma.vmem_to_hbm [thread:$0]  %s60_s4, 256, %s193_s2, [#allocation4]  }
  0x42   :  { %135 = dma.done.wait [#allocation4], 256  }
  0x43   :  { %136 = vsyncadd [#allocation4], 4294967040 }
  0x44   :  { %66 = vsyncpa [#allocation3], 1 }
  0x45   :  { %67 = vsyncpa [#allocation4], 1 }
  0x46   :  { %68 = vsyncpa [#allocation5], 1 }

</bundles_post_ra>
